<compile_context>
chip_gen: v6e
topology: v6e:2x2x1
jax: 0.10.0
libtpu: 0.0.40
codegen_flags: <defaults>
</compile_context>

<pallas_src>
import functools

import jax
import jax.numpy as jnp
from jax.experimental import pallas as pl
from jax.experimental.pallas import tpu as pltpu


def _round_up(x, m):
    return ((x + m - 1) // m) * m


def _pick_k_tile(d_in, tk, align=128):
    """Largest lane-aligned divisor of d_in that is <= tk (falls back to d_in)."""
    if d_in <= tk:
        return d_in
    t = (tk // align) * align
    while t >= align:
        if d_in % t == 0:
            return t
        t -= align
    return d_in


def com_output_kernel(h_ref, res_ref, w_ref, b_ref, g_ref, be_ref, o_ref, acc_ref):
    # h_ref:   (TM, TK)   hidden_states row/K tile (native dtype)
    # res_ref: (TM, D)    residual row tile (resident across K steps)
    # w_ref:   (D, TK)    dense weight tile in PyTorch [out, in] layout
    # b_ref:   (1, D)     dense bias   (f32)
    # g_ref:   (1, D)     LN weight    (f32)
    # be_ref:  (1, D)     LN bias      (f32)
    # o_ref:   (TM, D)    output tile
    # acc_ref: (TM, D)    f32 accumulator scratch
    k = pl.program_id(1)

    @pl.when(k == 0)
    def _():
        # Fold dense bias + (dropout = identity, eval) + residual into the
        # accumulator init; both blocks are already resident for this row tile.
        acc_ref[...] = b_ref[...] + res_ref[...].astype(jnp.float32)

    # h @ W^T without materializing W^T: contract h axis 1 with w axis 1.
    # Operands stay in native dtype (bf16 feeds the MXU directly); accumulate f32.
    acc_ref[...] += jax.lax.dot_general(
        h_ref[...], w_ref[...],
        dimension_numbers=(((1,), (1,)), ((), ())),
        preferred_element_type=jnp.float32)

    @pl.when(k == pl.num_programs(1) - 1)
    def _():
        # BertLayerNorm (TF style: eps inside the sqrt), f32 epilogue.
        y = acc_ref[...]
        u = jnp.mean(y, axis=-1, keepdims=True)
        d = y - u
        s = jnp.mean(d * d, axis=-1, keepdims=True)
        yn = d * jax.lax.rsqrt(s + 1e-12)
        o_ref[...] = (g_ref[...] * yn + be_ref[...]).astype(o_ref.dtype)


@functools.partial(jax.jit, static_argnames=("tm", "tk"))
def com_output(hidden_states, input_tensor, w, b, gamma, beta, *, tm=256, tk=512):
    """hidden_states, input_tensor: [rows, D]; w: [D, D] in PyTorch [out, in]
    layout; b, gamma, beta: [D]."""
    rows, d_in = hidden_states.shape
    d_out, d_in_w = w.shape
    assert d_in == d_in_w and d_out == d_in, "ComOutput is a square d_model layer"

    # Row tile: as large as requested, but never (much) larger than the row
    # count; pad rows to a multiple of the tile (tail handled by padding).
    tm_eff = min(tm, _round_up(rows, 8))
    rows_p = _round_up(rows, tm_eff)
    if rows_p != rows:
        pad = rows_p - rows
        hidden_states = jnp.pad(hidden_states, ((0, pad), (0, 0)))
        input_tensor = jnp.pad(input_tensor, ((0, pad), (0, 0)))

    # K tile: bound resident weight to (D, tk); pick the largest lane-aligned
    # divisor of D so BlockSpec shapes stay static and tiles stay uniform.
    tk_eff = _pick_k_tile(d_in, tk)

    # Pre-cast the small per-feature vectors once (f32 epilogue on all chips).
    b2 = b.reshape(1, d_out).astype(jnp.float32)
    g2 = gamma.reshape(1, d_out).astype(jnp.float32)
    be2 = beta.reshape(1, d_out).astype(jnp.float32)

    grid = (rows_p // tm_eff, d_in // tk_eff)
    itemsize = jnp.dtype(hidden_states.dtype).itemsize

    out = pl.pallas_call(
        com_output_kernel,
        out_shape=jax.ShapeDtypeStruct((rows_p, d_out), hidden_states.dtype),
        grid_spec=pltpu.PrefetchScalarGridSpec(
            num_scalar_prefetch=0,
            grid=grid,
            in_specs=[
                pl.BlockSpec((tm_eff, tk_eff), lambda i, k: (i, k)),   # hidden_states
                pl.BlockSpec((tm_eff, d_out), lambda i, k: (i, 0)),    # residual
                pl.BlockSpec((d_out, tk_eff), lambda i, k: (0, k)),    # W [out, in]
                pl.BlockSpec((1, d_out), lambda i, k: (0, 0)),         # dense bias
                pl.BlockSpec((1, d_out), lambda i, k: (0, 0)),         # LN weight
                pl.BlockSpec((1, d_out), lambda i, k: (0, 0)),         # LN bias
            ],
            out_specs=pl.BlockSpec((tm_eff, d_out), lambda i, k: (i, 0)),
            scratch_shapes=[pltpu.VMEM((tm_eff, d_out), jnp.float32)],
        ),
        compiler_params=pltpu.CompilerParams(
            dimension_semantics=("parallel", "arbitrary")),
        cost_estimate=pl.CostEstimate(
            flops=2 * rows_p * d_in * d_out,
            transcendentals=rows_p,
            bytes_accessed=(2 * rows_p * d_in + d_in * d_out
                            + rows_p * d_out) * itemsize),
    )(hidden_states, input_tensor, w, b2, g2, be2)

    return out[:rows] if rows_p != rows else out


def com_output_ref(hidden_states, input_tensor, w, b, gamma, beta):
    """Pure-JAX reference mirroring the PyTorch forward (eval mode)."""
    y = hidden_states.astype(jnp.float32) @ w.astype(jnp.float32).T + b
    y = y + input_tensor.astype(jnp.float32)
    u = jnp.mean(y, axis=-1, keepdims=True)
    s = jnp.mean((y - u) ** 2, axis=-1, keepdims=True)
    yn = (y - u) / jnp.sqrt(s + 1e-12)
    return gamma * yn + beta


if __name__ == "__main__":
    key = jax.random.PRNGKey(0)
    d_model = 128          # lane-aligned hidden size
    batch, seq = 2, 8
    rows = batch * seq

    k1, k2, k3, k4 = jax.random.split(key, 4)
    hidden_states = jax.random.normal(k1, (rows, d_model), dtype=jnp.float32)
    input_tensor = jax.random.normal(k2, (rows, d_model), dtype=jnp.float32)

    # Deterministic synthetic parameters (nn.Linear(d,d) + BertLayerNorm(d)).
    w = 0.02 * jax.random.normal(k3, (d_model, d_model), dtype=jnp.float32)  # [out, in]
    b = 0.01 * jax.random.normal(k4, (d_model,), dtype=jnp.float32)
    gamma = jnp.ones((d_model,), dtype=jnp.float32)
    beta = jnp.zeros((d_model,), dtype=jnp.float32)

    # --- f32 path, row count aligned to the (clamped) tile ---
    out = com_output(hidden_states, input_tensor, w, b, gamma, beta)
    out = jax.block_until_ready(out)
    ref = com_output_ref(hidden_states, input_tensor, w, b, gamma, beta)
    assert out.shape == (rows, d_model)
    assert jnp.allclose(out, ref, atol=1e-3, rtol=1e-3), "f32 mismatch vs reference"

    # --- tail handling: rows not a multiple of the row tile ---
    rows2 = 14
    h2 = hidden_states[:rows2]
    r2 = input_tensor[:rows2]
    out2 = jax.block_until_ready(com_output(h2, r2, w, b, gamma, beta))
    ref2 = com_output_ref(h2, r2, w, b, gamma, beta)
    assert out2.shape == (rows2, d_model)
    assert jnp.allclose(out2, ref2, atol=1e-3, rtol=1e-3), "tail mismatch vs reference"

    # --- bf16 activations/weights straight into the MXU (f32 accumulation) ---
    out_bf = com_output(hidden_states.astype(jnp.bfloat16),
                        input_tensor.astype(jnp.bfloat16),
                        w.astype(jnp.bfloat16), b, gamma, beta)
    out_bf = jax.block_until_ready(out_bf)
    assert out_bf.dtype == jnp.bfloat16
    assert jnp.allclose(out_bf.astype(jnp.float32), ref, atol=5e-2, rtol=5e-2), \
        "bf16 mismatch vs reference"

    print("KERNEL_OK")
</pallas_src>

<mosaic_0001>
module attributes {stable_mosaic.version = 11 : i64} {
  func.func @com_output_kernel(%arg0: i32, %arg1: i32, %arg2: memref<16x128xf32, #tpu.memory_space<vmem>>, %arg3: memref<16x128xf32, #tpu.memory_space<vmem>>, %arg4: memref<128x128xf32, #tpu.memory_space<vmem>>, %arg5: memref<1x128xf32, #tpu.memory_space<vmem>>, %arg6: memref<1x128xf32, #tpu.memory_space<vmem>>, %arg7: memref<1x128xf32, #tpu.memory_space<vmem>>, %arg8: memref<16x128xf32, #tpu.memory_space<vmem>>, %arg9: memref<16x128xf32, #tpu.memory_space<vmem>>) attributes {dimension_semantics = [#tpu.dimension_semantics<parallel>, #tpu.dimension_semantics<arbitrary>], iteration_bounds = array<i64: 1, 1>, scalar_prefetch = 0 : i64, scratch_operands = 1 : i64, tpu.core_type = #tpu.core_type<tc>, window_params = [{transform_indices = @transform_0, window_bounds = array<i64: 16, 128>}, {transform_indices = @transform_1, window_bounds = array<i64: 16, 128>}, {transform_indices = @transform_2, window_bounds = array<i64: 128, 128>}, {pipeline_mode = #tpu.pipeline_mode<synchronous>, transform_indices = @transform_3, window_bounds = array<i64: 1, 128>}, {pipeline_mode = #tpu.pipeline_mode<synchronous>, transform_indices = @transform_4, window_bounds = array<i64: 1, 128>}, {pipeline_mode = #tpu.pipeline_mode<synchronous>, transform_indices = @transform_5, window_bounds = array<i64: 1, 128>}, {transform_indices = @transform_6, window_bounds = array<i64: 16, 128>}]} {
    %c0_i32 = arith.constant 0 : i32
    %0 = arith.cmpi eq, %arg1, %c0_i32 : i32
    %1 = arith.extui %0 : i1 to i32
    %c0_i32_0 = arith.constant 0 : i32
    %2 = arith.cmpi ne, %1, %c0_i32_0 : i32
    scf.if %2 {
      %c0_10 = arith.constant 0 : index
      %c0_11 = arith.constant 0 : index
      %12 = vector.load %arg5[%c0_10, %c0_11] : memref<1x128xf32, #tpu.memory_space<vmem>>, vector<1x128xf32>
      %c0_12 = arith.constant 0 : index
      %c0_13 = arith.constant 0 : index
      %13 = vector.load %arg3[%c0_12, %c0_13] : memref<16x128xf32, #tpu.memory_space<vmem>>, vector<16x128xf32>
      %14 = vector.broadcast %12 : vector<1x128xf32> to vector<16x128xf32>
      %15 = arith.addf %14, %13 : vector<16x128xf32>
      %c0_14 = arith.constant 0 : index
      %c0_15 = arith.constant 0 : index
      %16 = vector.load %arg9[%c0_14, %c0_15] : memref<16x128xf32, #tpu.memory_space<vmem>>, vector<16x128xf32>
      tpu.vector_store %arg9[%c0_14, %c0_15], %15 {strides = array<i32>} : memref<16x128xf32, #tpu.memory_space<vmem>>, vector<16x128xf32>,
    } else {
    }
    %c0 = arith.constant 0 : index
    %c0_1 = arith.constant 0 : index
    %3 = vector.load %arg9[%c0, %c0_1] : memref<16x128xf32, #tpu.memory_space<vmem>>, vector<16x128xf32>
    %c0_2 = arith.constant 0 : index
    %c0_3 = arith.constant 0 : index
    %4 = vector.load %arg2[%c0_2, %c0_3] : memref<16x128xf32, #tpu.memory_space<vmem>>, vector<16x128xf32>
    %c0_4 = arith.constant 0 : index
    %c0_5 = arith.constant 0 : index
    %5 = vector.load %arg4[%c0_4, %c0_5] : memref<128x128xf32, #tpu.memory_space<vmem>>, vector<128x128xf32>
    %cst = arith.constant dense<0.000000e+00> : vector<16x128xf32>
    %6 = tpu.matmul %4, %5, %cst {dimension_numbers = #tpu.dot_dimension_numbers<[1], [1], [0], [0], [0, 0, 1, 0], [], []>} : vector<16x128xf32>, vector<128x128xf32>, vector<16x128xf32> -> vector<16x128xf32>
    %7 = arith.addf %3, %6 : vector<16x128xf32>
    %c0_6 = arith.constant 0 : index
    %c0_7 = arith.constant 0 : index
    %8 = vector.load %arg9[%c0_6, %c0_7] : memref<16x128xf32, #tpu.memory_space<vmem>>, vector<16x128xf32>
    tpu.vector_store %arg9[%c0_6, %c0_7], %7 {strides = array<i32>} : memref<16x128xf32, #tpu.memory_space<vmem>>, vector<16x128xf32>,
    %c0_i32_8 = arith.constant 0 : i32
    %9 = arith.cmpi eq, %arg1, %c0_i32_8 : i32
    %10 = arith.extui %9 : i1 to i32
    %c0_i32_9 = arith.constant 0 : i32
    %11 = arith.cmpi ne, %10, %c0_i32_9 : i32
    scf.if %11 {
      %c0_10 = arith.constant 0 : index
      %c0_11 = arith.constant 0 : index
      %12 = vector.load %arg9[%c0_10, %c0_11] : memref<16x128xf32, #tpu.memory_space<vmem>>, vector<16x128xf32>
      %cst_12 = arith.constant dense<0.000000e+00> : vector<16xf32>
      %13 = vector.multi_reduction <add>, %12, %cst_12 [1] : vector<16x128xf32> to vector<16xf32>
      %14 = vector.shape_cast %13 : vector<16xf32> to vector<16x1xf32>
      %cst_13 = arith.constant 1.280000e+02 : f32
      %15 = vector.broadcast %cst_13 : f32 to vector<16x1xf32>
      %16 = arith.divf %14, %15 : vector<16x1xf32>
      %17 = vector.broadcast %16 : vector<16x1xf32> to vector<16x128xf32>
      %18 = arith.subf %12, %17 : vector<16x128xf32>
      %19 = arith.mulf %18, %18 : vector<16x128xf32>
      %cst_14 = arith.constant dense<0.000000e+00> : vector<16xf32>
      %20 = vector.multi_reduction <add>, %19, %cst_14 [1] : vector<16x128xf32> to vector<16xf32>
      %21 = vector.shape_cast %20 : vector<16xf32> to vector<16x1xf32>
      %cst_15 = arith.constant 1.280000e+02 : f32
      %22 = vector.broadcast %cst_15 : f32 to vector<16x1xf32>
      %23 = arith.divf %21, %22 : vector<16x1xf32>
      %cst_16 = arith.constant 9.99999996E-13 : f32
      %24 = vector.broadcast %cst_16 : f32 to vector<16x1xf32>
      %25 = arith.addf %23, %24 : vector<16x1xf32>
      %26 = math.rsqrt %25 : vector<16x1xf32>
      %27 = vector.broadcast %26 : vector<16x1xf32> to vector<16x128xf32>
      %28 = arith.mulf %18, %27 : vector<16x128xf32>
      %c0_17 = arith.constant 0 : index
      %c0_18 = arith.constant 0 : index
      %29 = vector.load %arg6[%c0_17, %c0_18] : memref<1x128xf32, #tpu.memory_space<vmem>>, vector<1x128xf32>
      %30 = vector.broadcast %29 : vector<1x128xf32> to vector<16x128xf32>
      %31 = arith.mulf %30, %28 : vector<16x128xf32>
      %c0_19 = arith.constant 0 : index
      %c0_20 = arith.constant 0 : index
      %32 = vector.load %arg7[%c0_19, %c0_20] : memref<1x128xf32, #tpu.memory_space<vmem>>, vector<1x128xf32>
      %33 = vector.broadcast %32 : vector<1x128xf32> to vector<16x128xf32>
      %34 = arith.addf %31, %33 : vector<16x128xf32>
      %c0_21 = arith.constant 0 : index
      %c0_22 = arith.constant 0 : index
      %35 = vector.load %arg8[%c0_21, %c0_22] : memref<16x128xf32, #tpu.memory_space<vmem>>, vector<16x128xf32>
      tpu.vector_store %arg8[%c0_21, %c0_22], %34 {strides = array<i32>} : memref<16x128xf32, #tpu.memory_space<vmem>>, vector<16x128xf32>,
    } else {
    }
    return
  }
  func.func @transform_0(%arg0: i32, %arg1: i32) -> (i32, i32) {
    %c0_i32 = arith.constant 0 : i32
    return %arg0, %arg1 : i32, i32
  }
  func.func @transform_1(%arg0: i32, %arg1: i32) -> (i32, i32) {
    %c0_i32 = arith.constant 0 : i32
    %c0_i32_0 = arith.constant 0 : i32
    return %arg0, %c0_i32 : i32, i32
  }
  func.func @transform_2(%arg0: i32, %arg1: i32) -> (i32, i32) {
    %c0_i32 = arith.constant 0 : i32
    %c0_i32_0 = arith.constant 0 : i32
    return %c0_i32, %arg1 : i32, i32
  }
  func.func @transform_3(%arg0: i32, %arg1: i32) -> (i32, i32) {
    %c0_i32 = arith.constant 0 : i32
    %c0_i32_0 = arith.constant 0 : i32
    %c0_i32_1 = arith.constant 0 : i32
    return %c0_i32, %c0_i32_0 : i32, i32
  }
  func.func @transform_4(%arg0: i32, %arg1: i32) -> (i32, i32) {
    %c0_i32 = arith.constant 0 : i32
    %c0_i32_0 = arith.constant 0 : i32
    %c0_i32_1 = arith.constant 0 : i32
    return %c0_i32, %c0_i32_0 : i32, i32
  }
  func.func @transform_5(%arg0: i32, %arg1: i32) -> (i32, i32) {
    %c0_i32 = arith.constant 0 : i32
    %c0_i32_0 = arith.constant 0 : i32
    %c0_i32_1 = arith.constant 0 : i32
    return %c0_i32, %c0_i32_0 : i32, i32
  }
  func.func @transform_6(%arg0: i32, %arg1: i32) -> (i32, i32) {
    %c0_i32 = arith.constant 0 : i32
    %c0_i32_0 = arith.constant 0 : i32
    return %arg0, %c0_i32 : i32, i32
  }
}

</mosaic_0001>

<bundles_post_ra>
// kernel: com_output.1
= control target key start
LH: loop header
LB: loop body
LE: loop exit
PB: predicated region body
PF: predicated region fallthrough
CT: control target
= control target key end

     0   :  { %11 = vsyncpa [#allocation4], 0  ;;  %s473_s0 = inlined_call_operand.hbm [shape: f32[16,128], index: 0, kind: input, shape index: {}]   ;;  %s474_s1 = inlined_call_operand.hbm [shape: f32[16,128], index: 1, kind: input, shape index: {}]   ;;  %s475_s2 = inlined_call_operand.hbm [shape: f32[128,128], index: 2, kind: input, shape index: {}]   ;;  %s476_s3 = inlined_call_operand.vmem [shape: f32[1,128], index: 3, kind: input, shape index: {}]   ;;  %s477_s4 = inlined_call_operand.vmem [shape: f32[1,128], index: 4, kind: input, shape index: {}]   ;;  %s478_s5 = inlined_call_operand.vmem [shape: f32[1,128], index: 5, kind: input, shape index: {}]   ;;  %s479_s6 = inlined_call_operand.hbm [shape: f32[16,128], index: 6, kind: output, shape index: {}]  }
   0x1   :  { %12 = vsyncpa [#allocation7], 0 }
   0x2   :  { %13 = vsyncpa [#allocation5], 0  ;;  %s399_s21 = smov [#allocation6]   ;;  %s400_s23 = smov [#allocation3]  }
   0x3   :  { %s31_s22 = sshll.u32 %s399_s21, 4  ;;  %s19_s24 = sshll.u32 %s400_s23, 4  ;;  %s32_s22 = int_to_ptr.vmem [resolvable:$true] %s31_s22  ;;  %s20_s24 = int_to_ptr.vmem [resolvable:$true] %s19_s24 }
   0x4   :  { %s321_s25 = scalar_lea.vmem %s32_s22, 256  ;;  %p326_p1 = scmp.lt.s32.totalorder %s32_s22, %s32_s22 }
   0x5   :  { %p322_p0 = scmp.ne.s32.totalorder %s32_s22, %s321_s25  ;;  %p327_p2 = scmp.lt.s32.totalorder %s321_s25, %s321_s25 }
   0x7   :  { %p328_p3 = por %p327_p2, %p326_p1 }
   0x9   :  { %p329_p4 = pnand %p328_p3, %p322_p0 }
   0xb   :  { %332 = shalt.err (!%p329_p4)
}
   0xc   :  { %s401_s26 = smov 128   ;;  %s402_s27 = smov 8  }
   0xd   :  { %37 = dma.hbm_to_vmem [thread:$0]  %s474_s1, 256, %s32_s22, [#allocation7], %s401_s26, %s401_s26, %s402_s27  }
   0xe   :  { %s341_s30 = scalar_lea.vmem %s20_s24, 256  ;;  %p346_p6 = scmp.lt.s32.totalorder %s20_s24, %s20_s24 }
   0xf   :  { %p342_p5 = scmp.ne.s32.totalorder %s20_s24, %s341_s30  ;;  %p347_p7 = scmp.lt.s32.totalorder %s341_s30, %s341_s30 }
  0x11   :  { %p348_p8 = por %p347_p7, %p346_p6 }
  0x13   :  { %p349_p9 = pnand %p348_p8, %p342_p5 }
  0x15   :  { %352 = shalt.err (!%p349_p9)
}
  0x16   :  { %25 = dma.hbm_to_vmem [thread:$0]  %s473_s0, 256, %s20_s24, [#allocation4], %s401_s26, %s401_s26, %s402_s27  }
  0x17   :  { %s403_s9 = smov [#allocation8]  }
  0x18   :  { %s43_s10 = sshll.u32 %s403_s9, 4  ;;  %s44_s10 = int_to_ptr.vmem [resolvable:$true] %s43_s10 }
  0x19   :  { %s361_s11 = scalar_lea.vmem %s44_s10, 2048  ;;  %p366_p11 = scmp.lt.s32.totalorder %s44_s10, %s44_s10 }
  0x1a   :  { %p362_p10 = scmp.ne.s32.totalorder %s44_s10, %s361_s11  ;;  %p367_p12 = scmp.lt.s32.totalorder %s361_s11, %s361_s11 }
  0x1c   :  { %p368_p13 = por %p367_p12, %p366_p11 }
  0x1e   :  { %p369_p0 = pnand %p368_p13, %p362_p10 }
  0x20   :  { %372 = shalt.err (!%p369_p0)
}
  0x21   :  { %49 = dma.hbm_to_vmem [thread:$0]  %s475_s2, 2048, %s44_s10, [#allocation7], %s401_s26, %s401_s26, %s402_s27  }
  0x22   :  { %393 = dma.done.wait [#allocation4], 256  }
  0x23   :  { %394 = vsyncadd [#allocation4], 4294967040 }
  0x24   :  { %395 = dma.done.wait [#allocation7], 2304  }
  0x25   :  { %396 = vsyncadd [#allocation7], 4294964992  ;;  %v101_v0 = vld [vmem:[#allocation8 + $0x78] sm:$0xff]  ;;  %v100_v1 = vld [vmem:[#allocation8 + $0x70] sm:$0xff]  ;;  %s404_s16 = smov [#allocation9]  }
  0x26   :  { %268 = vmatprep.subr.mxu0 %v101_v0  ;;  %v99_v2 = vld [vmem:[#allocation8 + $0x68] sm:$0xff]  ;;  %v84_v3 = vld [vmem:[#allocation3] sm:$0xff]  ;;  %v97_v5 = vld [vmem:[#allocation8 + $0x58] sm:$0xff]  ;;  %s234_s17 = sshll.u32 %s404_s16, 4  ;;  %s235_s17 = int_to_ptr.vmem [resolvable:$true] %s234_s17 }
  0x27   :  { %269 = vmatpush3.xpose.msra.mxu0 %v101_v0  ;;  %300 = vmatprep.mubr.f32.mxu0 %v84_v3  ;;  %v98_v4 = vld [vmem:[#allocation8 + $0x60] sm:$0xff]  ;;  %v96_v6 = vld [vmem:[#allocation8 + $0x50] sm:$0xff]  ;;  %v95_v7 = vld [vmem:[#allocation8 + $0x48] sm:$0xff]  ;;  %s373_s18 = scalar_lea.vmem %s235_s17, 256  ;;  %p378_p2 = scmp.lt.s32.totalorder %s235_s17, %s235_s17 }
  0x28   :  { %270 = vmatprep.subr.mxu0 %v100_v1  ;;  %v94_v8 = vld [vmem:[#allocation8 + $0x40] sm:$0xff]  ;;  %v93_v9 = vld [vmem:[#allocation8 + $0x38] sm:$0xff]  ;;  %v92_v10 = vld [vmem:[#allocation8 + $0x30] sm:$0xff]  ;;  %p374_p1 = scmp.ne.s32.totalorder %s235_s17, %s373_s18  ;;  %p379_p3 = scmp.lt.s32.totalorder %s373_s18, %s373_s18 }
  0x29   :  { %v91_v11 = vld [vmem:[#allocation8 + $0x28] sm:$0xff]  ;;  %v90_v12 = vld [vmem:[#allocation8 + $0x20] sm:$0xff]  ;;  %v89_v13 = vld [vmem:[#allocation8 + $0x18] sm:$0xff] }
  0x2a   :  { %v88_v14 = vld [vmem:[#allocation8 + $0x10] sm:$0xff]  ;;  %v87_v15 = vld [vmem:[#allocation8 + $0x8] sm:$0xff]  ;;  %v86_v16 = vld [vmem:[#allocation8] sm:$0xff]  ;;  %p380_p4 = por %p379_p3, %p378_p2 }
  0x2b   :  { %271 = vmatpush3.xpose.msra.mxu0 %v100_v1  ;;  %v85_v17 = vld [vmem:[#allocation3 + $0x8] sm:$0xff]  ;;  %v70_v18 = vld [vmem:[#allocation6] sm:$0xff]  ;;  %v247_v19 = vld [vmem:[%s476_s3] ss:$0 sm:$0xff] }
  0x2c   :  { %272 = vmatprep.subr.mxu0 %v99_v2  ;;  %v78_v20 = vadd.f32 %v247_v19, %v70_v18  ;;  %v71_v21 = vld [vmem:[#allocation6 + $0x8] sm:$0xff]  ;;  %v248_v42 = vld [vmem:[%s477_s4] ss:$0 sm:$0xff]  ;;  %p381_p5 = pnand %p380_p4, %p374_p1 }
  0x2d   :  { %v79_v24 = vadd.f32 %v247_v19, %v71_v21  ;;  %v249_v44 = vld [vmem:[%s478_s5] ss:$0 sm:$0xff] }
  0x2f   :  { %273 = vmatpush3.xpose.msra.mxu0 %v99_v2 }
  0x30   :  { %274 = vmatprep.subr.mxu0 %v98_v4 }
  0x33   :  { %275 = vmatpush3.xpose.msra.mxu0 %v98_v4 }
  0x34   :  { %276 = vmatprep.subr.mxu0 %v97_v5 }
  0x37   :  { %277 = vmatpush3.xpose.msra.mxu0 %v97_v5 }
  0x38   :  { %278 = vmatprep.subr.mxu0 %v96_v6 }
  0x3b   :  { %279 = vmatpush3.xpose.msra.mxu0 %v96_v6 }
  0x3c   :  { %280 = vmatprep.subr.mxu0 %v95_v7 }
  0x3f   :  { %281 = vmatpush3.xpose.msra.mxu0 %v95_v7 }
  0x40   :  { %282 = vmatprep.subr.mxu0 %v94_v8 }
  0x43   :  { %283 = vmatpush3.xpose.msra.mxu0 %v94_v8 }
  0x44   :  { %284 = vmatprep.subr.mxu0 %v93_v9 }
  0x47   :  { %285 = vmatpush3.xpose.msra.mxu0 %v93_v9 }
  0x48   :  { %286 = vmatprep.subr.mxu0 %v92_v10 }
  0x4b   :  { %287 = vmatpush3.xpose.msra.mxu0 %v92_v10 }
  0x4c   :  { %288 = vmatprep.subr.mxu0 %v91_v11 }
  0x4f   :  { %289 = vmatpush3.xpose.msra.mxu0 %v91_v11 }
  0x50   :  { %290 = vmatprep.subr.mxu0 %v90_v12 }
  0x53   :  { %291 = vmatpush3.xpose.msra.mxu0 %v90_v12 }
  0x54   :  { %292 = vmatprep.subr.mxu0 %v89_v13 }
  0x57   :  { %293 = vmatpush3.xpose.msra.mxu0 %v89_v13 }
  0x58   :  { %294 = vmatprep.subr.mxu0 %v88_v14 }
  0x5b   :  { %295 = vmatpush3.xpose.msra.mxu0 %v88_v14 }
  0x5c   :  { %296 = vmatprep.subr.mxu0 %v87_v15 }
  0x5f   :  { %297 = vmatpush3.xpose.msra.mxu0 %v87_v15 }
  0x60   :  { %298 = vmatprep.subr.mxu0 %v86_v16 }
  0x63   :  { %299 = vmatpush3.xpose.msra.mxu0 %v86_v16 }
  0x66   :  { %301 = vmatmul.mubr.f32.vlgmr.msra.gmra.mxu0 %v85_v17 }
 0x126   :  { %v302_v22 = vpop.f32.mrf.mxu0 }
 0x127   :  { %v178_v26 = vadd.f32 %v302_v22, %v79_v24 }
 0x128   :  { %v168_v23 = vpop.f32.mrf.mxu0 }
 0x129   :  { %v177_v25 = vadd.f32 %v168_v23, %v78_v20 }
 0x12b   :  { %186 = vadd.xlane.f32.xlu0 %v177_v25 }
 0x12f   :  { %188 = vadd.xlane.f32.xlu0 %v178_v26 }
 0x1b4   :  { %v187_v27 = vpop.xlane.xlu0 %186 }
 0x1b5   :  { %v191_v28 = vmul.f32 0.0078125, %v187_v27 }
 0x1b7   :  { %v193_v29 = vsub.f32 %v177_v25, %v191_v28 }
 0x1b8   :  { %v189_v30 = vpop.xlane.xlu0 %188 }
 0x1b9   :  { %v192_v31 = vmul.f32 0.0078125, %v189_v30  ;;  %v195_v32 = vmul.f32 %v193_v29, %v193_v29 }
 0x1bb   :  { %v194_v33 = vsub.f32 %v178_v26, %v192_v31  ;;  %197 = vadd.xlane.f32.xlu1 %v195_v32 }
 0x1bd   :  { %v196_v34 = vmul.f32 %v194_v33, %v194_v33 }
 0x1bf   :  { %199 = vadd.xlane.f32.xlu1 %v196_v34 }
 0x244   :  { %v198_v35 = vpop.xlane.xlu1 %197 }
 0x245   :  { %v201_v36 = vmul.f32 0.0078125, %v198_v35 }
 0x247   :  { %v203_v37 = vadd.f32 1e-12, %v201_v36 }
 0x248   :  { %v200_v38 = vpop.xlane.xlu1 %199 }
 0x249   :  { %309 = vrsqrt.f32 %v203_v37  ;;  %v202_v39 = vmul.f32 0.0078125, %v200_v38 }
 0x24b   :  { %v204_v40 = vadd.f32 1e-12, %v202_v39 }
 0x24d   :  { %311 = vrsqrt.f32 %v204_v40 }
 0x256   :  { %v310_v41 = vpop.eup %309 }
 0x257   :  { %v207_v43 = vmul.f32 %v310_v41, %v193_v29 }
 0x259   :  { %v216_v45 = vmul.f32 %v248_v42, %v207_v43 }
 0x25a   :  { %v312_v46 = vpop.eup %311 }
 0x25b   :  { %v208_v47 = vmul.f32 %v312_v46, %v194_v33  ;;  %v225_v48 = vadd.f32 %v249_v44, %v216_v45 }
 0x25d   :  { %v217_v49 = vmul.f32 %v248_v42, %v208_v47  ;;  %227 = vst [vmem:[#allocation9] sm:$0xff] %v225_v48 }
 0x25f   :  { %v226_v50 = vadd.f32 %v249_v44, %v217_v49 }
 0x261   :  { %228 = vst [vmem:[#allocation9 + $0x8] sm:$0xff] %v226_v50 }
 0x262   :  { %384 = shalt.err (!%p381_p5)
}
 0x263   :  { %240 = dma.vmem_to_hbm [thread:$0]  %s235_s17, 256, %s479_s6, [#allocation5], %s401_s26, %s401_s26, %s402_s27  }
 0x264   :  { %397 = dma.done.wait [#allocation5], 256  }
 0x265   :  { %398 = vsyncadd [#allocation5], 4294967040 }
 0x266   :  { %244 = vsyncpa [#allocation4], 1 }
 0x267   :  { %245 = vsyncpa [#allocation7], 1 }
 0x268   :  { %246 = vsyncpa [#allocation5], 1 }

</bundles_post_ra>
